<compile_context>
chip_gen: v7x
topology: tpu7x:2x2x1
jax: 0.10.0
libtpu: 0.0.40
codegen_flags: <defaults>
</compile_context>

<pallas_src>
import jax
import jax.numpy as jnp
from jax.experimental import pallas as pl
from jax.experimental.pallas import tpu as pltpu

MAX_COL_TILE = 16384  # folded columns per grid step (= 32768 samples)


def _round_up(n, m):
    return ((n + m - 1) // m) * m


def _pick_col_tile(cols):
    """Column tile: multiple of 128, <= MAX_COL_TILE, and small enough that the
    grid has >= 2 steps when the batch allows it (v7x megacore sharding)."""
    target = _round_up(-(-cols // 2), 128)   # ceil(cols/2) rounded to lanes
    tile = min(MAX_COL_TILE, target)
    if tile >= cols:
        return cols                          # single full block (cols == 128 here)
    return tile


def _block_diag2(w):
    """blockdiag(w, w) without scipy (tiny, built once per call under jit)."""
    o, i = w.shape
    z = jnp.zeros((o, i), w.dtype)
    top = jnp.concatenate([w, z], axis=1)
    bot = jnp.concatenate([z, w], axis=1)
    return jnp.concatenate([top, bot], axis=0)


def _fold_params(params):
    w1f = _block_diag2(params["w1"].astype(jnp.float32))            # (24, 8)
    w2f = _block_diag2(params["w2"].astype(jnp.float32))            # (16, 24)
    w3f = _block_diag2(params["w3"].astype(jnp.float32))            # (6, 16)
    b1f = jnp.tile(params["b1"].astype(jnp.float32), 2).reshape(-1, 1)  # (24, 1)
    b2f = jnp.tile(params["b2"].astype(jnp.float32), 2).reshape(-1, 1)  # (16, 1)
    b3f = jnp.tile(params["b3"].astype(jnp.float32), 2).reshape(-1, 1)  # (6, 1)
    return w1f, b1f, w2f, b2f, w3f, b3f


def _mlp_kernel(x_ref, w1_ref, b1_ref, w2_ref, b2_ref, w3_ref, b3_ref, o_ref):
    # Folded lane-dense layout: each column = 2 samples, batch on the lane axis.
    #   x: (8, T)   h1: (24, T)   h2: (16, T)   out: (6, T)
    x = x_ref[...]
    h1 = jnp.dot(w1_ref[...], x, preferred_element_type=jnp.float32) + b1_ref[...]
    h1 = jnp.maximum(h1, 0.0)
    h2 = jnp.dot(w2_ref[...], h1, preferred_element_type=jnp.float32) + b2_ref[...]
    h2 = jnp.maximum(h2, 0.0)
    out = jnp.dot(w3_ref[...], h2, preferred_element_type=jnp.float32) + b3_ref[...]
    o_ref[...] = out.astype(o_ref.dtype)


def _net_forward_impl(x, params):
    """x: (B, 4) float32 -> (B, 3). Params in PyTorch layout: W (out,in), b (out,)."""
    B = x.shape[0]
    x = x.astype(jnp.float32)

    # Pair samples for the 2x sublane fold (pad a single row only if B is odd).
    Bp = B + (B % 2)
    if Bp != B:
        x = jnp.pad(x, ((0, 1), (0, 0)))
    half = Bp // 2

    # Fold (Bp, 4) -> (8, half): one fused transpose pass under jit.  This
    # REPLACES the (B,4)->(4,B) transpose a lane-dense kernel layout needs, so
    # it adds no HBM traffic.  Callers able to keep activations in this folded
    # layout end-to-end can feed x8 / consume out6 directly.
    x8 = x.reshape(2, half, 4).transpose(0, 2, 1).reshape(8, half)

    cols = half
    if cols < 128:                       # tiny batches only: one cheap lane pad
        x8 = jnp.pad(x8, ((0, 0), (0, 128 - cols)))
        cols = 128

    w1f, b1f, w2f, b2f, w3f, b3f = _fold_params(params)

    tile = _pick_col_tile(cols)
    grid = (pl.cdiv(cols, tile),)        # remainder handled by Pallas edge blocks

    def resident(a):                     # weights/biases: DMA once, stay in VMEM
        return pl.BlockSpec(a.shape, lambda i: (0, 0))

    out6 = pl.pallas_call(
        _mlp_kernel,
        out_shape=jax.ShapeDtypeStruct((6, cols), jnp.float32),
        grid=grid,
        in_specs=[
            pl.BlockSpec((8, tile), lambda i: (0, i)),   # streamed input tile
            resident(w1f), resident(b1f),
            resident(w2f), resident(b2f),
            resident(w3f), resident(b3f),
        ],
        out_specs=pl.BlockSpec((6, tile), lambda i: (0, i)),
        compiler_params=pltpu.CompilerParams(
            dimension_semantics=("parallel",),  # v7x: shard column tiles over 2 TCs
        ),
    )(x8, w1f, b1f, w2f, b2f, w3f, b3f)

    # Unfold (6, half) -> (Bp, 3) -> (B, 3); slice + reshape fuse under jit.
    out6 = out6[:, :half]
    y = out6.reshape(2, 3, half).transpose(0, 2, 1).reshape(Bp, 3)
    return y[:B]


net_forward = jax.jit(_net_forward_impl)


def init_params(key):
    """Deterministic init mimicking PyTorch nn.Linear (uniform +-1/sqrt(fan_in)),
    stored in PyTorch layout: W (out_features, in_features), b (out_features,)."""
    def linear(k, fan_in, fan_out):
        kw, kb = jax.random.split(k)
        bound = 1.0 / jnp.sqrt(fan_in)
        w = jax.random.uniform(kw, (fan_out, fan_in), jnp.float32, -bound, bound)
        b = jax.random.uniform(kb, (fan_out,), jnp.float32, -bound, bound)
        return w, b

    k1, k2, k3 = jax.random.split(key, 3)
    w1, b1 = linear(k1, 4, 12)
    w2, b2 = linear(k2, 12, 8)
    w3, b3 = linear(k3, 8, 3)
    return dict(w1=w1, b1=b1, w2=w2, b2=b2, w3=w3, b3=b3)


def net_forward_ref(x, params):
    """Pure-JAX reference (PyTorch semantics: y = x @ W^T + b)."""
    h = jnp.maximum(x @ params["w1"].T + params["b1"], 0.0)
    h = jnp.maximum(h @ params["w2"].T + params["b2"], 0.0)
    return h @ params["w3"].T + params["b3"]


if __name__ == "__main__":
    key = jax.random.PRNGKey(0)
    kp, kx = jax.random.split(key)
    params = init_params(kp)

    # Small shapes consistent with the 4->12->8->3 MLP:
    #   B=8   tiny batch (lane-pad path),
    #   B=37  odd batch (fold pad path),
    #   B=260 multi-step grid with a Pallas edge block (tiles 128 + 2 columns).
    for B in (8, 37, 260):
        x = jax.random.normal(jax.random.fold_in(kx, B), (B, 4), jnp.float32)
        out = jax.block_until_ready(net_forward(x, params))
        ref = net_forward_ref(x, params)
        assert out.shape == (B, 3), out.shape
        assert jnp.allclose(out, ref, atol=1e-5, rtol=1e-5), f"mismatch vs reference at B={B}"

    print("KERNEL_OK")
</pallas_src>

<mosaic_0001>
module attributes {stable_mosaic.version = 11 : i64} {
  func.func @_mlp_kernel(%arg0: i32, %arg1: memref<8x128xf32, #tpu.memory_space<vmem>>, %arg2: memref<24x8xf32, #tpu.memory_space<vmem>>, %arg3: memref<24x1xf32, #tpu.memory_space<vmem>>, %arg4: memref<16x24xf32, #tpu.memory_space<vmem>>, %arg5: memref<16x1xf32, #tpu.memory_space<vmem>>, %arg6: memref<6x16xf32, #tpu.memory_space<vmem>>, %arg7: memref<6x1xf32, #tpu.memory_space<vmem>>, %arg8: memref<6x128xf32, #tpu.memory_space<vmem>>) attributes {dimension_semantics = [#tpu.dimension_semantics<parallel>], iteration_bounds = array<i64: 1>, scalar_prefetch = 0 : i64, scratch_operands = 0 : i64, tpu.core_type = #tpu.core_type<tc>, window_params = [{transform_indices = @transform_0, window_bounds = array<i64: 8, 128>}, {pipeline_mode = #tpu.pipeline_mode<synchronous>, transform_indices = @transform_1, window_bounds = array<i64: 24, 8>}, {pipeline_mode = #tpu.pipeline_mode<synchronous>, transform_indices = @transform_2, window_bounds = array<i64: 24, 1>}, {pipeline_mode = #tpu.pipeline_mode<synchronous>, transform_indices = @transform_3, window_bounds = array<i64: 16, 24>}, {pipeline_mode = #tpu.pipeline_mode<synchronous>, transform_indices = @transform_4, window_bounds = array<i64: 16, 1>}, {pipeline_mode = #tpu.pipeline_mode<synchronous>, transform_indices = @transform_5, window_bounds = array<i64: 6, 16>}, {pipeline_mode = #tpu.pipeline_mode<synchronous>, transform_indices = @transform_6, window_bounds = array<i64: 6, 1>}, {transform_indices = @transform_7, window_bounds = array<i64: 6, 128>}]} {
    %c0 = arith.constant 0 : index
    %c0_0 = arith.constant 0 : index
    %0 = vector.load %arg1[%c0, %c0_0] : memref<8x128xf32, #tpu.memory_space<vmem>>, vector<8x128xf32>
    %c0_1 = arith.constant 0 : index
    %c0_2 = arith.constant 0 : index
    %1 = vector.load %arg2[%c0_1, %c0_2] : memref<24x8xf32, #tpu.memory_space<vmem>>, vector<24x8xf32>
    %cst = arith.constant dense<0.000000e+00> : vector<24x128xf32>
    %2 = tpu.matmul %1, %0, %cst {dimension_numbers = #tpu.dot_dimension_numbers<[1], [0], [0], [1], [0, 0, 1, 1], [], []>} : vector<24x8xf32>, vector<8x128xf32>, vector<24x128xf32> -> vector<24x128xf32>
    %c0_3 = arith.constant 0 : index
    %c0_4 = arith.constant 0 : index
    %3 = vector.load %arg3[%c0_3, %c0_4] : memref<24x1xf32, #tpu.memory_space<vmem>>, vector<24x1xf32>
    %4 = vector.broadcast %3 : vector<24x1xf32> to vector<24x128xf32>
    %5 = arith.addf %2, %4 : vector<24x128xf32>
    %cst_5 = arith.constant 0.000000e+00 : f32
    %6 = vector.broadcast %cst_5 : f32 to vector<24x128xf32>
    %7 = arith.maximumf %5, %6 : vector<24x128xf32>
    %c0_6 = arith.constant 0 : index
    %c0_7 = arith.constant 0 : index
    %8 = vector.load %arg4[%c0_6, %c0_7] : memref<16x24xf32, #tpu.memory_space<vmem>>, vector<16x24xf32>
    %cst_8 = arith.constant dense<0.000000e+00> : vector<16x128xf32>
    %9 = tpu.matmul %8, %7, %cst_8 {dimension_numbers = #tpu.dot_dimension_numbers<[1], [0], [0], [1], [0, 0, 1, 1], [], []>} : vector<16x24xf32>, vector<24x128xf32>, vector<16x128xf32> -> vector<16x128xf32>
    %c0_9 = arith.constant 0 : index
    %c0_10 = arith.constant 0 : index
    %10 = vector.load %arg5[%c0_9, %c0_10] : memref<16x1xf32, #tpu.memory_space<vmem>>, vector<16x1xf32>
    %11 = vector.broadcast %10 : vector<16x1xf32> to vector<16x128xf32>
    %12 = arith.addf %9, %11 : vector<16x128xf32>
    %cst_11 = arith.constant 0.000000e+00 : f32
    %13 = vector.broadcast %cst_11 : f32 to vector<16x128xf32>
    %14 = arith.maximumf %12, %13 : vector<16x128xf32>
    %c0_12 = arith.constant 0 : index
    %c0_13 = arith.constant 0 : index
    %15 = vector.load %arg6[%c0_12, %c0_13] : memref<6x16xf32, #tpu.memory_space<vmem>>, vector<6x16xf32>
    %cst_14 = arith.constant dense<0.000000e+00> : vector<6x128xf32>
    %16 = tpu.matmul %15, %14, %cst_14 {dimension_numbers = #tpu.dot_dimension_numbers<[1], [0], [0], [1], [0, 0, 1, 1], [], []>} : vector<6x16xf32>, vector<16x128xf32>, vector<6x128xf32> -> vector<6x128xf32>
    %c0_15 = arith.constant 0 : index
    %c0_16 = arith.constant 0 : index
    %17 = vector.load %arg7[%c0_15, %c0_16] : memref<6x1xf32, #tpu.memory_space<vmem>>, vector<6x1xf32>
    %18 = vector.broadcast %17 : vector<6x1xf32> to vector<6x128xf32>
    %19 = arith.addf %16, %18 : vector<6x128xf32>
    %c0_17 = arith.constant 0 : index
    %c0_18 = arith.constant 0 : index
    %20 = vector.load %arg8[%c0_17, %c0_18] : memref<6x128xf32, #tpu.memory_space<vmem>>, vector<6x128xf32>
    tpu.vector_store %arg8[%c0_17, %c0_18], %19 {strides = array<i32>} : memref<6x128xf32, #tpu.memory_space<vmem>>, vector<6x128xf32>,
    return
  }
  func.func @transform_0(%arg0: i32) -> (i32, i32) {
    %c0_i32 = arith.constant 0 : i32
    %c0_i32_0 = arith.constant 0 : i32
    return %c0_i32, %arg0 : i32, i32
  }
  func.func @transform_1(%arg0: i32) -> (i32, i32) {
    %c0_i32 = arith.constant 0 : i32
    %c0_i32_0 = arith.constant 0 : i32
    %c0_i32_1 = arith.constant 0 : i32
    return %c0_i32, %c0_i32_0 : i32, i32
  }
  func.func @transform_2(%arg0: i32) -> (i32, i32) {
    %c0_i32 = arith.constant 0 : i32
    %c0_i32_0 = arith.constant 0 : i32
    %c0_i32_1 = arith.constant 0 : i32
    return %c0_i32, %c0_i32_0 : i32, i32
  }
  func.func @transform_3(%arg0: i32) -> (i32, i32) {
    %c0_i32 = arith.constant 0 : i32
    %c0_i32_0 = arith.constant 0 : i32
    %c0_i32_1 = arith.constant 0 : i32
    return %c0_i32, %c0_i32_0 : i32, i32
  }
  func.func @transform_4(%arg0: i32) -> (i32, i32) {
    %c0_i32 = arith.constant 0 : i32
    %c0_i32_0 = arith.constant 0 : i32
    %c0_i32_1 = arith.constant 0 : i32
    return %c0_i32, %c0_i32_0 : i32, i32
  }
  func.func @transform_5(%arg0: i32) -> (i32, i32) {
    %c0_i32 = arith.constant 0 : i32
    %c0_i32_0 = arith.constant 0 : i32
    %c0_i32_1 = arith.constant 0 : i32
    return %c0_i32, %c0_i32_0 : i32, i32
  }
  func.func @transform_6(%arg0: i32) -> (i32, i32) {
    %c0_i32 = arith.constant 0 : i32
    %c0_i32_0 = arith.constant 0 : i32
    %c0_i32_1 = arith.constant 0 : i32
    return %c0_i32, %c0_i32_0 : i32, i32
  }
  func.func @transform_7(%arg0: i32) -> (i32, i32) {
    %c0_i32 = arith.constant 0 : i32
    %c0_i32_0 = arith.constant 0 : i32
    return %c0_i32, %arg0 : i32, i32
  }
}

</mosaic_0001>

<bundles_post_ra>
// kernel: tile.28
= control target key start
LH: loop header
LB: loop body
LE: loop exit
PB: predicated region body
PF: predicated region fallthrough
CT: control target
= control target key end

     0   :  { %s22_s0 = inlined_call_operand.vmem [shape: f32[3], index: 0, kind: input, shape index: {}]   ;;  %s23_s1 = inlined_call_operand.vmem [shape: f32[2,3], index: 1, kind: output, shape index: {}]  }
   0x1   :  { %v4_v0 = vld [vmem:[%s22_s0] ss:$0 sm:$0xff] }
   0x2   :  { %5 = vst [vmem:[%s23_s1] sm:$0x3] %v4_v0 }

// kernel: tile.23
= control target key start
LH: loop header
LB: loop body
LE: loop exit
PB: predicated region body
PF: predicated region fallthrough
CT: control target
= control target key end

     0   :  { %s22_s0 = inlined_call_operand.vmem [shape: f32[8], index: 0, kind: input, shape index: {}]   ;;  %s23_s1 = inlined_call_operand.vmem [shape: f32[2,8], index: 1, kind: output, shape index: {}]  }
   0x1   :  { %v4_v0 = vld [vmem:[%s22_s0] ss:$0 sm:$0xff] }
   0x2   :  { %5 = vst [vmem:[%s23_s1] sm:$0x3] %v4_v0 }

// kernel: tile.18
= control target key start
LH: loop header
LB: loop body
LE: loop exit
PB: predicated region body
PF: predicated region fallthrough
CT: control target
= control target key end

     0   :  { %s22_s0 = inlined_call_operand.vmem [shape: f32[12], index: 0, kind: input, shape index: {}]   ;;  %s23_s1 = inlined_call_operand.vmem [shape: f32[2,12], index: 1, kind: output, shape index: {}]  }
   0x1   :  { %v4_v0 = vld [vmem:[%s22_s0] ss:$0 sm:$0xff] }
   0x2   :  { %5 = vst [vmem:[%s23_s1] sm:$0x3] %v4_v0 }

// kernel: tile.2
= control target key start
LH: loop header
LB: loop body
LE: loop exit
PB: predicated region body
PF: predicated region fallthrough
CT: control target
= control target key end

     0   :  { %vm7_vm0 = vcmask 7168   ;;  %s26_s10 = smov 126   ;;  %s49_s0 = inlined_call_operand.vmem [shape: f32[2,3], index: 0, kind: input, shape index: {}]   ;;  %s50_s1 = inlined_call_operand.vmem [shape: f32[6,1], index: 1, kind: output, shape index: {}]  }
   0x1   :  { %v4_v0 = vld [vmem:[%s49_s0] sm:$0x3]  ;;  %s25_s0 = smov 127  }
   0x2   :  { %5 = vst [vmem:[#allocation0] sm:$0x3] %v4_v0 }
   0x9   :  { %v9_v1 = vld [vmem:[#allocation0] sm:$0x3]  }
   0xa   :  { %v6_v2 = vld [vmem:[#allocation0] sm:$0x3]   ;;  %10 = vrot.lane.b32.xlu0 %v9_v1, %s25_s0 }
   0xb   :  { %8 = vst.msk [vmem:[%s50_s1] ss:$3 sm:$0x3] %vm7_vm0, %v6_v2   ;;  %v15_v3 = vld [vmem:[#allocation0] sm:$0x3]  }
   0xe   :  { %16 = vrot.lane.b32.xlu0 %v15_v3, %s26_s10 }
  0x7c   :  { %v11_v4 = vpop.permute.xlu0 %10  }
  0x7d   :  { %21 = vst.msk [vmem:[%s50_s1 + $0x1] ss:$3 sm:$0x3] %vm7_vm0, %v11_v4  }
  0x80   :  { %v17_v5 = vpop.permute.xlu0 %16  }
  0x81   :  { %22 = vst.msk [vmem:[%s50_s1 + $0x2] ss:$3 sm:$0x3] %vm7_vm0, %v17_v5  }

// kernel: tile.1
= control target key start
LH: loop header
LB: loop body
LE: loop exit
PB: predicated region body
PF: predicated region fallthrough
CT: control target
= control target key end

     0   :  { %s66_s8 = smov 125   ;;  %vm7_vm0 = vcmask 7168   ;;  %s67_s11 = smov 126   ;;  %s117_s0 = inlined_call_operand.vmem [shape: f32[2,8], index: 0, kind: input, shape index: {}]   ;;  %s118_s1 = inlined_call_operand.vmem [shape: f32[16,1], index: 1, kind: output, shape index: {}]  }
   0x1   :  { %v4_v0 = vld [vmem:[%s117_s0] sm:$0x3]  ;;  %s65_s0 = smov 127   ;;  %s68_s12 = smov 124  }
   0x2   :  { %5 = vst [vmem:[#allocation0] sm:$0x3] %v4_v0  ;;  %s69_s13 = smov 123   ;;  %s70_s14 = smov 122  }
   0x3   :  { %s71_s15 = smov 121  }
   0x9   :  { %v9_v1 = vld [vmem:[#allocation0] sm:$0x3]  }
   0xa   :  { %v21_v2 = vld [vmem:[#allocation0] sm:$0x3]   ;;  %10 = vrot.lane.b32.xlu0 %v9_v1, %s65_s0 }
   0xb   :  { %22 = vrot.lane.b32.xlu1 %v21_v2, %s66_s8  ;;  %v15_v3 = vld [vmem:[#allocation0] sm:$0x3]  }
   0xc   :  { %v27_v4 = vld [vmem:[#allocation0] sm:$0x3]  }
   0xd   :  { %v6_v5 = vld [vmem:[#allocation0] sm:$0x3]  }
   0xe   :  { %8 = vst.msk [vmem:[%s118_s1] ss:$8 sm:$0x3] %vm7_vm0, %v6_v5   ;;  %16 = vrot.lane.b32.xlu0 %v15_v3, %s67_s11  ;;  %v33_v6 = vld [vmem:[#allocation0] sm:$0x3]  }
   0xf   :  { %28 = vrot.lane.b32.xlu1 %v27_v4, %s68_s12  ;;  %v39_v7 = vld [vmem:[#allocation0] sm:$0x3]  }
  0x10   :  { %v45_v8 = vld [vmem:[#allocation0] sm:$0x3]  }
  0x12   :  { %34 = vrot.lane.b32.xlu0 %v33_v6, %s69_s13 }
  0x13   :  { %40 = vrot.lane.b32.xlu1 %v39_v7, %s70_s14 }
  0x16   :  { %46 = vrot.lane.b32.xlu0 %v45_v8, %s71_s15 }
  0x7c   :  { %v11_v9 = vpop.permute.xlu0 %10  }
  0x7d   :  { %v23_v10 = vpop.permute.xlu1 %22   ;;  %51 = vst.msk [vmem:[%s118_s1 + $0x1] ss:$8 sm:$0x3] %vm7_vm0, %v11_v9  }
  0x7e   :  { %53 = vst.msk [vmem:[%s118_s1 + $0x3] ss:$8 sm:$0x3] %vm7_vm0, %v23_v10  }
  0x80   :  { %v17_v11 = vpop.permute.xlu0 %16  }
  0x81   :  { %v29_v12 = vpop.permute.xlu1 %28   ;;  %52 = vst.msk [vmem:[%s118_s1 + $0x2] ss:$8 sm:$0x3] %vm7_vm0, %v17_v11  }
  0x82   :  { %54 = vst.msk [vmem:[%s118_s1 + $0x4] ss:$8 sm:$0x3] %vm7_vm0, %v29_v12  }
  0x84   :  { %v35_v13 = vpop.permute.xlu0 %34  }
  0x85   :  { %v41_v14 = vpop.permute.xlu1 %40   ;;  %55 = vst.msk [vmem:[%s118_s1 + $0x5] ss:$8 sm:$0x3] %vm7_vm0, %v35_v13  }
  0x86   :  { %56 = vst.msk [vmem:[%s118_s1 + $0x6] ss:$8 sm:$0x3] %vm7_vm0, %v41_v14  }
  0x88   :  { %v47_v15 = vpop.permute.xlu0 %46  }
  0x89   :  { %57 = vst.msk [vmem:[%s118_s1 + $0x7] ss:$8 sm:$0x3] %vm7_vm0, %v47_v15  }

// kernel: tile.0
= control target key start
LH: loop header
LB: loop body
LE: loop exit
PB: predicated region body
PF: predicated region fallthrough
CT: control target
= control target key end

     0   :  { %s98_s8 = smov 125   ;;  %vm7_vm0 = vcmask 7168   ;;  %s99_s11 = smov 126   ;;  %s169_s0 = inlined_call_operand.vmem [shape: f32[2,12], index: 0, kind: input, shape index: {}]   ;;  %s170_s1 = inlined_call_operand.vmem [shape: f32[24,1], index: 1, kind: output, shape index: {}]  }
   0x1   :  { %v4_v0 = vld [vmem:[%s169_s0] sm:$0x3]  ;;  %s97_s0 = smov 127   ;;  %s100_s12 = smov 124  }
   0x2   :  { %5 = vst [vmem:[#allocation0] sm:$0x3] %v4_v0  ;;  %s101_s13 = smov 123   ;;  %s102_s14 = smov 122  }
   0x3   :  { %s103_s15 = smov 121   ;;  %s104_s16 = smov 120  }
   0x4   :  { %s105_s17 = smov 119   ;;  %s106_s18 = smov 118  }
   0x5   :  { %s107_s19 = smov 117  }
   0x9   :  { %v9_v1 = vld [vmem:[#allocation0] sm:$0x3]  }
   0xa   :  { %v21_v2 = vld [vmem:[#allocation0] sm:$0x3]   ;;  %10 = vrot.lane.b32.xlu0 %v9_v1, %s97_s0 }
   0xb   :  { %22 = vrot.lane.b32.xlu1 %v21_v2, %s98_s8  ;;  %v15_v3 = vld [vmem:[#allocation0] sm:$0x3]  }
   0xc   :  { %v27_v4 = vld [vmem:[#allocation0] sm:$0x3]  }
   0xd   :  { %v6_v5 = vld [vmem:[#allocation0] sm:$0x3]  }
   0xe   :  { %8 = vst.msk [vmem:[%s170_s1] ss:$12 sm:$0x3] %vm7_vm0, %v6_v5   ;;  %16 = vrot.lane.b32.xlu0 %v15_v3, %s99_s11  ;;  %v33_v6 = vld [vmem:[#allocation0] sm:$0x3]  }
   0xf   :  { %28 = vrot.lane.b32.xlu1 %v27_v4, %s100_s12  ;;  %v39_v7 = vld [vmem:[#allocation0] sm:$0x3]  }
  0x10   :  { %v45_v8 = vld [vmem:[#allocation0] sm:$0x3]  }
  0x11   :  { %v51_v9 = vld [vmem:[#allocation0] sm:$0x3]  }
  0x12   :  { %34 = vrot.lane.b32.xlu0 %v33_v6, %s101_s13  ;;  %v57_v10 = vld [vmem:[#allocation0] sm:$0x3]  }
  0x13   :  { %40 = vrot.lane.b32.xlu1 %v39_v7, %s102_s14  ;;  %v63_v11 = vld [vmem:[#allocation0] sm:$0x3]  }
  0x14   :  { %v69_v12 = vld [vmem:[#allocation0] sm:$0x3]  }
  0x16   :  { %46 = vrot.lane.b32.xlu0 %v45_v8, %s103_s15 }
  0x17   :  { %52 = vrot.lane.b32.xlu1 %v51_v9, %s104_s16 }
  0x1a   :  { %58 = vrot.lane.b32.xlu0 %v57_v10, %s105_s17 }
  0x1b   :  { %64 = vrot.lane.b32.xlu1 %v63_v11, %s106_s18 }
  0x1e   :  { %70 = vrot.lane.b32.xlu0 %v69_v12, %s107_s19 }
  0x7c   :  { %v11_v13 = vpop.permute.xlu0 %10  }
  0x7d   :  { %v23_v14 = vpop.permute.xlu1 %22   ;;  %75 = vst.msk [vmem:[%s170_s1 + $0x1] ss:$12 sm:$0x3] %vm7_vm0, %v11_v13  }
  0x7e   :  { %77 = vst.msk [vmem:[%s170_s1 + $0x3] ss:$12 sm:$0x3] %vm7_vm0, %v23_v14  }
  0x80   :  { %v17_v15 = vpop.permute.xlu0 %16  }
  0x81   :  { %v29_v16 = vpop.permute.xlu1 %28   ;;  %76 = vst.msk [vmem:[%s170_s1 + $0x2] ss:$12 sm:$0x3] %vm7_vm0, %v17_v15  }
  0x82   :  { %78 = vst.msk [vmem:[%s170_s1 + $0x4] ss:$12 sm:$0x3] %vm7_vm0, %v29_v16  }
  0x84   :  { %v35_v17 = vpop.permute.xlu0 %34  }
  0x85   :  { %v41_v18 = vpop.permute.xlu1 %40   ;;  %79 = vst.msk [vmem:[%s170_s1 + $0x5] ss:$12 sm:$0x3] %vm7_vm0, %v35_v17  }
  0x86   :  { %80 = vst.msk [vmem:[%s170_s1 + $0x6] ss:$12 sm:$0x3] %vm7_vm0, %v41_v18  }
  0x88   :  { %v47_v19 = vpop.permute.xlu0 %46  }
  0x89   :  { %v53_v20 = vpop.permute.xlu1 %52   ;;  %81 = vst.msk [vmem:[%s170_s1 + $0x7] ss:$12 sm:$0x3] %vm7_vm0, %v47_v19  }
  0x8a   :  { %82 = vst.msk [vmem:[%s170_s1 + $0x8] ss:$12 sm:$0x3] %vm7_vm0, %v53_v20  }
  0x8c   :  { %v59_v21 = vpop.permute.xlu0 %58  }
  0x8d   :  { %v65_v22 = vpop.permute.xlu1 %64   ;;  %83 = vst.msk [vmem:[%s170_s1 + $0x9] ss:$12 sm:$0x3] %vm7_vm0, %v59_v21  }
  0x8e   :  { %84 = vst.msk [vmem:[%s170_s1 + $0xa] ss:$12 sm:$0x3] %vm7_vm0, %v65_v22  }
  0x90   :  { %v71_v23 = vpop.permute.xlu0 %70  }
  0x91   :  { %85 = vst.msk [vmem:[%s170_s1 + $0xb] ss:$12 sm:$0x3] %vm7_vm0, %v71_v23  }

// kernel: _net_forward_impl.1
= control target key start
LH: loop header
LB: loop body
LE: loop exit
PB: predicated region body
PF: predicated region fallthrough
CT: control target
= control target key end

     0   :  { %vm48_vm0 = vcmask 64512   ;;  %v383_v0 = vmov 0.0   ;;  %vm384_vm1 = vmmov 0   ;;  %v385_v3 = vmov 0   ;;  %s478_s0 = inlined_call_operand.vmem [shape: f32[8,128], index: 0, kind: input, shape index: {}]   ;;  %s479_s1 = inlined_call_operand.vmem [shape: f32[24,8], index: 1, kind: input, shape index: {}]   ;;  %s480_s2 = inlined_call_operand.vmem [shape: f32[24,1], index: 2, kind: input, shape index: {}]   ;;  %s481_s4 = inlined_call_operand.vmem [shape: f32[16,1], index: 4, kind: input, shape index: {}]   ;;  %s482_s6 = inlined_call_operand.vmem [shape: f32[6,1], index: 6, kind: input, shape index: {}]   ;;  %s483_s3 = inlined_call_operand.vmem [shape: f32[16,24], index: 3, kind: input, shape index: {}]   ;;  %s484_s5 = inlined_call_operand.vmem [shape: f32[6,16], index: 5, kind: input, shape index: {}]   ;;  %s485_s7 = inlined_call_operand.vmem [shape: f32[6,128], index: 7, kind: output, shape index: {}]  }
   0x1   :  { %343 = vmatprep.subr.mxu0 %v383_v0  ;;  %v26_v1 = vld [vmem:[%s478_s0] sm:$0xff]  ;;  %345 = vmatprep.mubr.msk.f32.mxu0 %vm384_vm1, %v383_v0  ;;  %v32_v5 = vld [vmem:[%s480_s2 + $0x10] sm:$0xff]  ;;  %v28_v6 = vld [vmem:[%s479_s1 + $0x8] sm:$0xff]  ;;  %vm155_vm2 = vcmask 195584   ;;  %v386_v30 = vmov 0.0|0.0   ;;  %vm246_vm3 = vcmask 130048  }
   0x2   :  { %v27_v2 = vld [vmem:[%s479_s1] sm:$0xff]  ;;  %344 = vmatpush3.msra.mxu0 %v26_v1  ;;  %381 = vset.pattern.permute.xlu0 %v385_v3  ;;  %v31_v7 = vld [vmem:[%s480_s2 + $0x8] sm:$0xff]  ;;  %v29_v9 = vld [vmem:[%s479_s1 + $0x10] sm:$0xff] }
   0x3   :  { %v30_v4 = vld [vmem:[%s480_s2] sm:$0xff]  ;;  %346 = vmatmul.mubr.msk.f32.vlgmr.msra.gmra.mrb[0].mxu0 %vm48_vm0, %v27_v2  ;;  %382 = vset.pattern.permute.xlu1 %v385_v3  ;;  %v144_v10 = vld [vmem:[%s481_s4 + $0x8] sm:$0xff] }
   0x4   :  { %35 = vperm.xlu0 %381, %v30_v4   ;;  %348 = vmatprep.mubr.msk.f32.mxu0 %vm384_vm1, %v383_v0  ;;  %v143_v8 = vld [vmem:[%s481_s4] sm:$0xff]  ;;  %v142_v29 = vld [vmem:[%s483_s3 + $0x8] sm:$0xff] }
   0x5   :  { %45 = vperm.xlu1 %382, %v32_v5   ;;  %v240_v11 = vld [vmem:[%s482_s6] sm:$0x3f] }
   0x6   :  { %v141_v12 = vld [vmem:[%s483_s3] sm:$0xff] }
   0x7   :  { %349 = vmatmul.mubr.msk.f32.gmra.mrb[2].mxu0 %vm48_vm0, %v28_v6  ;;  %360 = vmatprep.mubr.msk.f32.mxu1 %vm155_vm2, %v141_v12  ;;  %v239_v40 = vld [vmem:[%s484_s5] sm:$0x3f] }
   0x8   :  { %40 = vperm.xlu0 %381, %v31_v7   ;;  %351 = vmatprep.mubr.msk.f32.mxu0 %vm384_vm1, %v383_v0 }
   0x9   :  { %147 = vperm.xlu1 %382, %v143_v8  }
   0xb   :  { %352 = vmatmul.mubr.msk.f32.gmra.mrb[4].mxu0 %vm48_vm0, %v29_v9 }
   0xc   :  { %152 = vperm.xlu0 %381, %v144_v10  }
   0xd   :  { %243 = vperm.xlu1 %382, %v240_v11  }
  0x83   :  { %v36_v13 = vpop.permute.xlu0 %35 }
  0x84   :  { %v46_v23 = vpop.permute.xlu1 %45 }
  0x87   :  { %v41_v17 = vpop.permute.xlu0 %40 }
  0x88   :  { %v148_v33 = vpop.permute.xlu1 %147 }
  0x8b   :  { %v153_v31 = vpop.permute.xlu0 %152 }
  0x8c   :  { %v244_v41 = vpop.permute.xlu1 %243 }
  0xd6   :  { %v124_v14 = vpop.f32.mrb[0].mxu0 }
  0xd7   :  { %v347_v15 = vpop.f32.mrb[1].mxu0  ;;  %v125_v16 = vadd.f32 %v124_v14, %v36_v13 }
  0xd9   :  { %v138_v21 = vmax.f32 %v125_v16, 0.0 }
  0xda   :  { %v129_v18 = vpop.f32.mrb[2].mxu0 }
  0xdb   :  { %v130_v19 = vadd.f32 %v129_v18, %v41_v17  ;;  %v350_v20 = vpop.f32.mrb[3].mxu0 }
  0xdd   :  { %v139_v22 = vmax.f32 %v130_v19, 0.0 }
  0xde   :  { %v134_v24 = vpop.f32.mrb[4].mxu0 }
  0xdf   :  { %v135_v25 = vadd.f32 %v134_v24, %v46_v23  ;;  %v353_v26 = vpop.f32.mrb[5].mxu0  ;;  %v370_v27 = vpack.c.bf16 %v139_v22, %v138_v21 }
  0xe1   :  { %v140_v28 = vmax.f32 %v135_v25, 0.0  ;;  %371 = vmatprep.subr.bf16.mxu1 %v370_v27 }
  0xe2   :  { %373 = vmatpush3.bf16.msra.mxu1 %v370_v27 }
  0xe3   :  { %358 = vmatprep.subr.mxu1 %v140_v28 }
  0xe6   :  { %359 = vmatpush3.msra.mxu1 %v140_v28 }
  0xe7   :  { %361 = vmatmul.mubr.msk.f32.vlgmr.msra.gmra.mrb[0].mxu1 %vm155_vm2, %v142_v29  ;;  %374 = vmatprep.subr.bf16.mxu1 %v386_v30 }
  0xe8   :  { %367 = vmatprep.mubr.msk.f32.mxu1 %vm384_vm1, %v383_v0 }
 0x1ba   :  { %v362_v32 = vpop.f32.mrb[0].mxu1 }
 0x1bb   :  { %v234_v34 = vadd.f32 %v362_v32, %v153_v31  ;;  %v228_v35 = vpop.f32.mrb[1].mxu1 }
 0x1bc   :  { %v229_v36 = vadd.f32 %v228_v35, %v148_v33 }
 0x1bd   :  { %v238_v37 = vmax.f32 %v234_v34, 0.0 }
 0x1be   :  { %v237_v38 = vmax.f32 %v229_v36, 0.0 }
 0x1c0   :  { %v375_v39 = vpack.c.bf16 %v238_v37, %v237_v38 }
 0x1c2   :  { %376 = vmatpush3.bf16.msra.mxu1 %v375_v39 }
 0x1c5   :  { %368 = vmatmul.mubr.msk.f32.vlgmr.msra.gmra.mrb[2].mxu1 %vm246_vm3, %v239_v40 }
 0x298   :  { %v316_v42 = vpop.f32.mrb[2].mxu1 }
 0x299   :  { %v317_v43 = vadd.f32 %v316_v42, %v244_v41  ;;  %v369_v44 = vpop.f32.mrb[3].mxu1 }
 0x29b   :  { %320 = vst [vmem:[%s485_s7] sm:$0x3f] %v317_v43 }

</bundles_post_ra>
